<compile_context>
chip_gen: v7x
topology: tpu7x:2x2x1
jax: 0.10.0
libtpu: 0.0.40
codegen_flags: <defaults>
</compile_context>

<pallas_src>
import math

import jax
import jax.numpy as jnp
from jax.experimental import pallas as pl
from jax.experimental.pallas import tpu as pltpu


def _make_grad_kernel(img_h: int, img_w: int):
    """Kernel over a (TB*H, G*W) lane-packed block of f32 pixels."""

    def kernel(x_ref, o_ref):
        x = x_ref[...]                                   # (TR, WP) = (TB*H, G*W)
        tr, wp = x.shape
        # Per-image row/col indices (computed once per block). The % keeps the masks
        # correct when several images share the sublane axis (TB > 1) and/or the
        # lane axis (G > 1).
        row = jax.lax.broadcasted_iota(jnp.int32, (tr, wp), 0) % img_h
        col = jax.lax.broadcasted_iota(jnp.int32, (tr, wp), 1) % img_w
        zero = jnp.zeros((), x.dtype)

        # Shifted neighbours with zero padding at image borders.
        # roll -> XLU slot (free w.r.t. VPU); compare/select -> VPU.
        # Every roll wraparound position (block edge, packed-image seam) is a border
        # pixel and is zeroed by the masks, so no data bleeds between images.
        # NOTE: the masks must be applied to the operands (not to x_v/x_h after the
        # subtraction): at the border the correct conv value is the one-sided term.
        x_up    = jnp.where(row == 0,         zero, pltpu.roll(x, shift=1,      axis=0))  # x[i-1,j]
        x_down  = jnp.where(row == img_h - 1, zero, pltpu.roll(x, shift=tr - 1, axis=0))  # x[i+1,j]
        x_left  = jnp.where(col == 0,         zero, pltpu.roll(x, shift=1,      axis=1))  # x[i,j-1]
        x_right = jnp.where(col == img_w - 1, zero, pltpu.roll(x, shift=wp - 1, axis=1))  # x[i,j+1]

        x_v = x_down - x_up           # == conv2d(x, weight_v, padding=1)
        x_h = x_right - x_left        # == conv2d(x, weight_h, padding=1)
        # Single fused store; sqrt lowers to the (otherwise idle) EUP slot.
        o_ref[...] = jnp.sqrt(x_v * x_v + x_h * x_h + jnp.asarray(1e-6, x.dtype))

    return kernel


def grad_layer(x, *, lane_target=128, max_block_elems=1 << 20):
    """x: (N, 1, H, W) -> (N, 1, H, W); same forward semantics as GradLayer."""
    N, C, H, W = x.shape
    assert C == 1, "GradLayer's conv weights are (1, 1, 3, 3): input must have 1 channel"
    dtype = x.dtype
    itemsize = jnp.dtype(dtype).itemsize
    x3 = x.reshape(N, H, W)

    # ---- lane packing: put G images side-by-side along the lane axis ----
    G = max(1, lane_target // W) if W < lane_target else 1
    Np = ((N + G - 1) // G) * G
    if Np != N:
        x3 = jnp.pad(x3, ((0, Np - N), (0, 0), (0, 0)))   # padded images are discarded later
    NG = Np // G
    WP = G * W
    # (NG, G, H, W) -> (NG, H, G, W) -> (NG*H, G*W): lane-dense slab, layout plumbing only.
    xp = x3.reshape(NG, G, H, W).transpose(0, 2, 1, 3).reshape(NG * H, WP)

    # ---- rows per block: whole packed image-groups, bounded by a VMEM budget ----
    group_elems = H * WP
    cap = max(1, max_block_elems // group_elems)
    if cap >= NG:
        TB = NG                                  # one block covers the whole (padded) batch
    else:
        tb_unit = 8 // math.gcd(H, 8)            # keep TB*H a multiple of 8 (sublane tiling)
        TB = max(tb_unit, (cap // tb_unit) * tb_unit)
        TB = min(TB, NG)
    NGp = ((NG + TB - 1) // TB) * TB
    if NGp != NG:
        xp = jnp.pad(xp, ((0, (NGp - NG) * H), (0, 0)))
    grid_n = NGp // TB
    TR = TB * H
    # TODO(synk): a single image larger than the block budget (> ~2k x 2k f32) still
    # gets a whole-image block; a halo-carrying H-tiling scheme would be needed there.

    block_bytes = TR * WP * itemsize
    # Double-buffered input + output is 4x block_bytes; leave headroom, clamp to a
    # value safe on v5e/v6e (<=128 MiB physical) and v7x (64 MiB physical).
    vmem_limit = int(min(48 * 2**20, max(32 * 2**20, 6 * block_bytes)))

    elems = NGp * H * WP
    cost = pl.CostEstimate(
        flops=6 * elems,                 # 2 sub + 2 mul + 2 add per element
        transcendentals=elems,           # one sqrt per element
        bytes_accessed=2 * elems * itemsize,
    )

    out_p = pl.pallas_call(
        _make_grad_kernel(H, W),
        out_shape=jax.ShapeDtypeStruct((NGp * H, WP), dtype),
        grid=(grid_n,),
        in_specs=[pl.BlockSpec((TR, WP), lambda b: (b, 0))],
        out_specs=pl.BlockSpec((TR, WP), lambda b: (b, 0)),
        compiler_params=pltpu.CompilerParams(
            dimension_semantics=("parallel",),
            vmem_limit_bytes=vmem_limit,
        ),
        cost_estimate=cost,
    )(xp)

    # ---- unpack back to the original (N, 1, H, W) layout ----
    out = (
        out_p[: NG * H]
        .reshape(NG, H, G, W)
        .transpose(0, 2, 1, 3)
        .reshape(Np, H, W)[:N]
        .reshape(N, C, H, W)
    )
    return out


def _reference(x):
    # Pure-JAX reference: explicit zero padding, matching F.conv2d(padding=1) with the
    # fixed gradient kernels.
    xp = jnp.pad(x, ((0, 0), (0, 0), (1, 1), (1, 1)))
    x_v = xp[:, :, 2:, 1:-1] - xp[:, :, :-2, 1:-1]   # x[i+1,j] - x[i-1,j]
    x_h = xp[:, :, 1:-1, 2:] - xp[:, :, 1:-1, :-2]   # x[i,j+1] - x[i,j-1]
    return jnp.sqrt(x_v * x_v + x_h * x_h + 1e-6)


if __name__ == "__main__":
    key = jax.random.PRNGKey(0)
    x = jax.random.normal(key, (2, 1, 16, 16), dtype=jnp.float32)

    out = jax.block_until_ready(grad_layer(x))
    ref = _reference(x)

    assert out.shape == (2, 1, 16, 16)
    assert jnp.allclose(out, ref, atol=1e-5, rtol=1e-5), "mismatch vs reference"
    print("KERNEL_OK")
</pallas_src>

<mosaic_0001>
module attributes {stable_mosaic.version = 11 : i64} {
  func.func @kernel(%arg0: i32, %arg1: memref<16x128xf32, #tpu.memory_space<vmem>>, %arg2: memref<16x128xf32, #tpu.memory_space<vmem>>) attributes {dimension_semantics = [#tpu.dimension_semantics<parallel>], iteration_bounds = array<i64: 1>, scalar_prefetch = 0 : i64, scratch_operands = 0 : i64, tpu.core_type = #tpu.core_type<tc>, window_params = [{transform_indices = @transform_0, window_bounds = array<i64: 16, 128>}, {transform_indices = @transform_1, window_bounds = array<i64: 16, 128>}]} {
    %c0 = arith.constant 0 : index
    %c0_0 = arith.constant 0 : index
    %0 = vector.load %arg1[%c0, %c0_0] : memref<16x128xf32, #tpu.memory_space<vmem>>, vector<16x128xf32>
    %1 = tpu.iota {dimensions = array<i32: 0>} : vector<16x128xi32>
    %c16_i32 = arith.constant 16 : i32
    %c0_i32 = arith.constant 0 : i32
    %2 = arith.cmpi eq, %c16_i32, %c0_i32 : i32
    %c1_i32 = arith.constant 1 : i32
    %3 = arith.select %2, %c1_i32, %c16_i32 : i32
    %4 = vector.broadcast %3 : i32 to vector<16x128xi32>
    %5 = arith.remsi %1, %4 : vector<16x128xi32>
    %c0_i32_1 = arith.constant 0 : i32
    %6 = vector.broadcast %c0_i32_1 : i32 to vector<16x128xi32>
    %7 = arith.cmpi ne, %5, %6 : vector<16x128xi32>
    %c0_i32_2 = arith.constant 0 : i32
    %8 = vector.broadcast %c0_i32_2 : i32 to vector<16x128xi32>
    %9 = arith.cmpi slt, %5, %8 : vector<16x128xi32>
    %c0_i32_3 = arith.constant 0 : i32
    %10 = arith.cmpi slt, %3, %c0_i32_3 : i32
    %11 = vector.broadcast %10 : i1 to vector<16x128xi1>
    %12 = vector.broadcast %11 : vector<16x128xi1> to vector<16x128xi1>
    %13 = arith.xori %9, %12 : vector<16x128xi1>
    %14 = arith.andi %13, %7 : vector<16x128xi1>
    %15 = vector.broadcast %3 : i32 to vector<16x128xi32>
    %16 = arith.addi %5, %15 : vector<16x128xi32>
    %17 = arith.select %14, %16, %5 : vector<16x128xi1>, vector<16x128xi32>
    %18 = tpu.iota {dimensions = array<i32: 1>} : vector<16x128xi32>
    %c16_i32_4 = arith.constant 16 : i32
    %c0_i32_5 = arith.constant 0 : i32
    %19 = arith.cmpi eq, %c16_i32_4, %c0_i32_5 : i32
    %c1_i32_6 = arith.constant 1 : i32
    %20 = arith.select %19, %c1_i32_6, %c16_i32_4 : i32
    %21 = vector.broadcast %20 : i32 to vector<16x128xi32>
    %22 = arith.remsi %18, %21 : vector<16x128xi32>
    %c0_i32_7 = arith.constant 0 : i32
    %23 = vector.broadcast %c0_i32_7 : i32 to vector<16x128xi32>
    %24 = arith.cmpi ne, %22, %23 : vector<16x128xi32>
    %c0_i32_8 = arith.constant 0 : i32
    %25 = vector.broadcast %c0_i32_8 : i32 to vector<16x128xi32>
    %26 = arith.cmpi slt, %22, %25 : vector<16x128xi32>
    %c0_i32_9 = arith.constant 0 : i32
    %27 = arith.cmpi slt, %20, %c0_i32_9 : i32
    %28 = vector.broadcast %27 : i1 to vector<16x128xi1>
    %29 = vector.broadcast %28 : vector<16x128xi1> to vector<16x128xi1>
    %30 = arith.xori %26, %29 : vector<16x128xi1>
    %31 = arith.andi %30, %24 : vector<16x128xi1>
    %32 = vector.broadcast %20 : i32 to vector<16x128xi32>
    %33 = arith.addi %22, %32 : vector<16x128xi32>
    %34 = arith.select %31, %33, %22 : vector<16x128xi1>, vector<16x128xi32>
    %c0_i32_10 = arith.constant 0 : i32
    %35 = vector.broadcast %c0_i32_10 : i32 to vector<16x128xi32>
    %36 = arith.cmpi eq, %17, %35 : vector<16x128xi32>
    %c1_i32_11 = arith.constant 1 : i32
    %37 = tpu.dynamic_rotate %0 by %c1_i32_11 dim 0 : vector<16x128xf32>, i32 -> vector<16x128xf32>
    %cst = arith.constant 0.000000e+00 : f32
    %38 = vector.broadcast %cst : f32 to vector<16x128xf32>
    %39 = arith.select %36, %38, %37 : vector<16x128xi1>, vector<16x128xf32>
    %c15_i32 = arith.constant 15 : i32
    %40 = vector.broadcast %c15_i32 : i32 to vector<16x128xi32>
    %41 = arith.cmpi eq, %17, %40 : vector<16x128xi32>
    %c15_i32_12 = arith.constant 15 : i32
    %42 = tpu.dynamic_rotate %0 by %c15_i32_12 dim 0 : vector<16x128xf32>, i32 -> vector<16x128xf32>
    %cst_13 = arith.constant 0.000000e+00 : f32
    %43 = vector.broadcast %cst_13 : f32 to vector<16x128xf32>
    %44 = arith.select %41, %43, %42 : vector<16x128xi1>, vector<16x128xf32>
    %c0_i32_14 = arith.constant 0 : i32
    %45 = vector.broadcast %c0_i32_14 : i32 to vector<16x128xi32>
    %46 = arith.cmpi eq, %34, %45 : vector<16x128xi32>
    %c1_i32_15 = arith.constant 1 : i32
    %47 = tpu.dynamic_rotate %0 by %c1_i32_15 dim 1 : vector<16x128xf32>, i32 -> vector<16x128xf32>
    %cst_16 = arith.constant 0.000000e+00 : f32
    %48 = vector.broadcast %cst_16 : f32 to vector<16x128xf32>
    %49 = arith.select %46, %48, %47 : vector<16x128xi1>, vector<16x128xf32>
    %c15_i32_17 = arith.constant 15 : i32
    %50 = vector.broadcast %c15_i32_17 : i32 to vector<16x128xi32>
    %51 = arith.cmpi eq, %34, %50 : vector<16x128xi32>
    %c127_i32 = arith.constant 127 : i32
    %52 = tpu.dynamic_rotate %0 by %c127_i32 dim 1 : vector<16x128xf32>, i32 -> vector<16x128xf32>
    %cst_18 = arith.constant 0.000000e+00 : f32
    %53 = vector.broadcast %cst_18 : f32 to vector<16x128xf32>
    %54 = arith.select %51, %53, %52 : vector<16x128xi1>, vector<16x128xf32>
    %55 = arith.subf %44, %39 : vector<16x128xf32>
    %56 = arith.subf %54, %49 : vector<16x128xf32>
    %57 = arith.mulf %55, %55 : vector<16x128xf32>
    %58 = arith.mulf %56, %56 : vector<16x128xf32>
    %59 = arith.addf %57, %58 : vector<16x128xf32>
    %cst_19 = arith.constant 9.99999997E-7 : f32
    %60 = vector.broadcast %cst_19 : f32 to vector<16x128xf32>
    %61 = arith.addf %59, %60 : vector<16x128xf32>
    %62 = math.sqrt %61 : vector<16x128xf32>
    %c0_20 = arith.constant 0 : index
    %c0_21 = arith.constant 0 : index
    %63 = vector.load %arg2[%c0_20, %c0_21] : memref<16x128xf32, #tpu.memory_space<vmem>>, vector<16x128xf32>
    tpu.vector_store %arg2[%c0_20, %c0_21], %62 {strides = array<i32>} : memref<16x128xf32, #tpu.memory_space<vmem>>, vector<16x128xf32>,
    return
  }
  func.func @transform_0(%arg0: i32) -> (i32, i32) {
    %c0_i32 = arith.constant 0 : i32
    %c0_i32_0 = arith.constant 0 : i32
    return %arg0, %c0_i32 : i32, i32
  }
  func.func @transform_1(%arg0: i32) -> (i32, i32) {
    %c0_i32 = arith.constant 0 : i32
    %c0_i32_0 = arith.constant 0 : i32
    return %arg0, %c0_i32 : i32, i32
  }
}

</mosaic_0001>

<bundles_post_ra>
// kernel: tpu_custom_call.1
= control target key start
LH: loop header
LB: loop body
LE: loop exit
PB: predicated region body
PF: predicated region fallthrough
CT: control target
= control target key end

     0   :  { %6 = vsyncpa [#allocation3], 0  ;;  %s253_s0 = inlined_call_operand.hbm [shape: f32[16,128], index: 0, kind: input, shape index: {}]   ;;  %s254_s1 = inlined_call_operand.hbm [shape: f32[16,128], index: 1, kind: output, shape index: {}]  }
   0x1   :  { %7 = vsyncpa [#allocation4], 0  ;;  %s201_s6 = smov [#allocation2]   ;;  %s153_s10 = scalar_lea.hbm %s253_s0, 256 }
   0x2   :  { %s13_s7 = sshll.u32 %s201_s6, 4  ;;  %p154_p0 = scmp.ne.s32.totalorder %s253_s0, %s153_s10  ;;  %s14_s7 = int_to_ptr.vmem [resolvable:$true] %s13_s7 }
   0x3   :  { %p157_p1 = scmp.lt.u32.totalorder %s153_s10, %s253_s0 }
   0x5   :  { %p159_p2 = pnand %p157_p1, %p154_p0 }
   0x7   :  { %162 = shalt.err (!%p159_p2)
}
   0x8   :  { %s163_s15 = scalar_lea.vmem %s14_s7, 256  ;;  %p168_p4 = scmp.lt.s32.totalorder %s14_s7, %s14_s7 }
   0x9   :  { %p164_p3 = scmp.ne.s32.totalorder %s14_s7, %s163_s15  ;;  %p169_p5 = scmp.lt.s32.totalorder %s163_s15, %s163_s15 }
   0xb   :  { %p170_p6 = por %p169_p5, %p168_p4 }
   0xd   :  { %p171_p7 = pnand %p170_p6, %p164_p3 }
   0xf   :  { %174 = shalt.err (!%p171_p7)
}
  0x10   :  { %s202_s16 = smov 128   ;;  %s203_s17 = smov 8  }
  0x11   :  { %19 = dma.hbm_to_vmem [thread:$0]  %s253_s0, 256, %s14_s7, [#allocation3], %s202_s16, %s202_s16, %s203_s17  }
  0x12   :  { %197 = dma.done.wait [#allocation3], 256  }
  0x13   :  { %198 = vsyncadd [#allocation3], 4294967040  ;;  %v25_v0 = vlaneseq  ;;  %v23_v4 = vld [vmem:[#allocation2] sm:$0xff]  ;;  %v24_v5 = vld [vmem:[#allocation2 + $0x8] sm:$0xff]  ;;  %s204_s20 = smov 127   ;;  %s205_s0 = smov 1  }
  0x14   :  { %92 = vrot.lane.b32.xlu1 %v23_v4, %s204_s20  ;;  %v68_v8 = vrot.slane %v23_v4, 7  ;;  %v77_v9 = vrot.slane %v23_v4, 1  ;;  %85 = vrot.lane.b32.xlu0 %v23_v4, %s205_s0  ;;  %v69_v10 = vrot.slane %v24_v5, 7  ;;  %v78_v11 = vrot.slane %v24_v5, 1  ;;  %s206_s21 = smov [#allocation5]  }
  0x15   :  { %v26_v1 = vshrl.u32 %v25_v0, 7  ;;  %v53_v20 = vand.u32 127, %v25_v0  ;;  %s131_s22 = sshll.u32 %s206_s21, 4  ;;  %s132_s22 = int_to_ptr.vmem [resolvable:$true] %s131_s22 }
  0x16   :  { %s175_s23 = scalar_lea.vmem %s132_s22, 256  ;;  %p180_p9 = scmp.lt.s32.totalorder %s132_s22, %s132_s22 }
  0x17   :  { %v32_v2 = vand.u32 15, %v26_v1  ;;  %v27_v3 = vadd.s32 8, %v26_v1  ;;  %vm70_vm1 = vcmp.lt.s32.totalorder %v26_v1, 1  ;;  %vm79_vm2 = vcmp.lt.s32.totalorder %v26_v1, 7  ;;  %p176_p8 = scmp.ne.s32.totalorder %s132_s22, %s175_s23  ;;  %p181_p10 = scmp.lt.s32.totalorder %s175_s23, %s175_s23 }
  0x18   :  { %v72_v12 = vsel %vm70_vm1, %v69_v10, %v68_v8  ;;  %v80_v13 = vsel %vm79_vm2, %v77_v9, %v78_v11  ;;  %v71_v14 = vsel %vm70_vm1, %v68_v8, %v69_v10  ;;  %v81_v15 = vsel %vm79_vm2, %v78_v11, %v77_v9  ;;  %94 = vrot.lane.b32.xlu1 %v24_v5, %s204_s20 }
  0x19   :  { %vm232_vm0 = vcmp.eq.s32.totalorder %v32_v2, 0  ;;  %v39_v7 = vand.u32 15, %v27_v3  ;;  %87 = vrot.lane.b32.xlu0 %v24_v5, %s205_s0  ;;  %v58_v21 = vand.u32 15, %v53_v20  ;;  %p182_p11 = por %p181_p10, %p180_p9 }
  0x1a   :  { %v73_v16 = vsel %vm232_vm0, 0.0, %v72_v12 }
  0x1b   :  { %vm76_vm3 = vcmp.eq.s32.totalorder %v39_v7, 15  ;;  %v98_v18 = vsub.f32 %v80_v13, %v73_v16  ;;  %vm91_vm4 = vcmp.eq.s32.totalorder %v58_v21, 15  ;;  %vm84_vm5 = vcmp.eq.s32.totalorder %v58_v21, 0  ;;  %p183_p12 = pnand %p182_p11, %p176_p8 }
  0x1c   :  { %v83_v17 = vsel %vm76_vm3, 0.0, %v81_v15 }
  0x1d   :  { %v99_v19 = vsub.f32 %v83_v17, %v71_v14  ;;  %v102_v27 = vmul.f32 %v98_v18, %v98_v18 }
  0x1f   :  { %v103_v35 = vmul.f32 %v99_v19, %v99_v19 }
  0x86   :  { %v93_v22 = vpop.permute.xlu1 %92  ;;  %v86_v23 = vpop.permute.xlu0 %85 }
  0x87   :  { %v96_v24 = vsel %vm91_vm4, 0.0, %v93_v22  ;;  %v89_v25 = vsel %vm84_vm5, 0.0, %v86_v23 }
  0x88   :  { %v100_v26 = vsub.f32 %v96_v24, %v89_v25 }
  0x8a   :  { %v104_v28 = vmul.f32 %v100_v26, %v100_v26  ;;  %v95_v29 = vpop.permute.xlu1 %94 }
  0x8b   :  { %v88_v30 = vpop.permute.xlu0 %87  ;;  %v97_v31 = vsel %vm91_vm4, 0.0, %v95_v29 }
  0x8c   :  { %v90_v32 = vsel %vm84_vm5, 0.0, %v88_v30  ;;  %v106_v33 = vadd.f32 %v104_v28, %v102_v27 }
  0x8d   :  { %v101_v34 = vsub.f32 %v97_v31, %v90_v32 }
  0x8e   :  { %v108_v36 = vadd.f32 1e-06, %v106_v33 }
  0x8f   :  { %v105_v37 = vmul.f32 %v101_v34, %v101_v34 }
  0x90   :  { %149 = vrsqrt.f32 %v108_v36  ;;  %vm112_vm6 = vcmp.eq.f32.partialorder %v108_v36, inf  ;;  %v115_v42 = vand.u32 2147483648, %v108_v36  ;;  %vm114_vm7 = vcmp.eq.f32.partialorder %v108_v36, 0.0 }
  0x91   :  { %v107_v38 = vadd.f32 %v105_v37, %v103_v35 }
  0x93   :  { %v109_v39 = vadd.f32 1e-06, %v107_v38 }
  0x95   :  { %151 = vrsqrt.f32 %v109_v39  ;;  %vm119_vm8 = vcmp.eq.f32.partialorder %v109_v39, inf  ;;  %v122_v47 = vand.u32 2147483648, %v109_v39  ;;  %vm121_vm9 = vcmp.eq.f32.partialorder %v109_v39, 0.0 }
  0x9a   :  { %v150_v40 = vpop.eup %149 }
  0x9b   :  { %v111_v41 = vmul.f32 %v150_v40, %v108_v36 }
  0x9d   :  { %v113_v43 = vsel %vm112_vm6, %v108_v36, %v111_v41 }
  0x9e   :  { %v116_v45 = vsel %vm114_vm7, %v115_v42, %v113_v43 }
  0x9f   :  { %v152_v44 = vpop.eup %151  ;;  %124 = vst [vmem:[#allocation5] sm:$0xff] %v116_v45 }
  0xa0   :  { %v118_v46 = vmul.f32 %v152_v44, %v109_v39 }
  0xa2   :  { %v120_v48 = vsel %vm119_vm8, %v109_v39, %v118_v46 }
  0xa3   :  { %v123_v49 = vsel %vm121_vm9, %v122_v47, %v120_v48 }
  0xa4   :  { %125 = vst [vmem:[#allocation5 + $0x8] sm:$0xff] %v123_v49 }
  0xa5   :  { %186 = shalt.err (!%p183_p12)
}
  0xa6   :  { %s187_s26 = scalar_lea.hbm %s254_s1, 256 }
  0xa7   :  { %p188_p13 = scmp.ne.s32.totalorder %s254_s1, %s187_s26  ;;  %p191_p0 = scmp.lt.u32.totalorder %s187_s26, %s254_s1 }
  0xa9   :  { %p193_p1 = pnand %p191_p0, %p188_p13 }
  0xab   :  { %196 = shalt.err (!%p193_p1)
}
  0xac   :  { %137 = dma.vmem_to_hbm [thread:$0]  %s132_s22, 256, %s254_s1, [#allocation4], %s202_s16, %s202_s16, %s203_s17  }
  0xad   :  { %199 = dma.done.wait [#allocation4], 256  }
  0xae   :  { %200 = vsyncadd [#allocation4], 4294967040 }
  0xaf   :  { %141 = vsyncpa [#allocation3], 1 }
  0xb0   :  { %142 = vsyncpa [#allocation4], 1 }

</bundles_post_ra>
